<compile_context>
chip_gen: v6e
topology: v6e:2x2x1
jax: 0.10.0
libtpu: 0.0.40
codegen_flags: <defaults>
</compile_context>

<pallas_src>
import jax
import jax.numpy as jnp
from jax.experimental import pallas as pl
from jax.experimental.pallas import tpu as pltpu


# ---------------------------------------------------------------------------
# helpers
# ---------------------------------------------------------------------------
def _round_up(x, m):
    return ((x + m - 1) // m) * m


def _cdiv(a, b):
    return (a + b - 1) // b


def _pad2d(a, rows, cols):
    pr, pc = rows - a.shape[0], cols - a.shape[1]
    if pr == 0 and pc == 0:
        return a
    return jnp.pad(a, ((0, pr), (0, pc)))


def _spec(shape, index_map, single_buffer=False):
    """BlockSpec helper; single_buffer=True keeps one VMEM buffer (grid-invariant operands)."""
    if single_buffer and hasattr(pl, "Buffered"):
        return pl.BlockSpec(shape, index_map, pipeline_mode=pl.Buffered(buffer_count=1))
    return pl.BlockSpec(shape, index_map)


# ---------------------------------------------------------------------------
# kernels  (grid = (batch_tiles [parallel], k_tiles [arbitrary, reduction last]))
# ---------------------------------------------------------------------------
def _body_kernel(x_ref, wb_ref, bb_ref, emb_ref, acc_ref):
    k = pl.program_id(1)

    @pl.when(k == 0)
    def _():
        acc_ref[...] = jnp.zeros_like(acc_ref)

    acc_ref[...] += jnp.dot(x_ref[...].astype(wb_ref.dtype), wb_ref[...],
                            preferred_element_type=jnp.float32)

    @pl.when(k == pl.num_programs(1) - 1)
    def _():
        emb = jnp.maximum(acc_ref[...] + bb_ref[...], 0.0)
        emb_ref[...] = emb.astype(emb_ref.dtype)


def _combine_kernel(x_ref, wb_ref, bb_ref, wh_ref, bhm_ref, o_ref, acc_ref):
    k = pl.program_id(1)

    @pl.when(k == 0)
    def _():
        acc_ref[...] = jnp.zeros_like(acc_ref)

    # body matmul (K-accumulated in f32 VMEM scratch; embedding never hits HBM)
    acc_ref[...] += jnp.dot(x_ref[...].astype(wb_ref.dtype), wb_ref[...],
                            preferred_element_type=jnp.float32)

    @pl.when(k == pl.num_programs(1) - 1)
    def _():
        emb = jnp.maximum(acc_ref[...] + bb_ref[...], 0.0)
        out = jnp.dot(emb.astype(wh_ref.dtype), wh_ref[...],
                      preferred_element_type=jnp.float32)
        # bhm_ref already contains b_head + mass_shift (folded on the host)
        o_ref[...] = (out + bhm_ref[...]).astype(o_ref.dtype)


# ---------------------------------------------------------------------------
# wrapper
# ---------------------------------------------------------------------------
def combine_general_forward(batch, params, mass_shift, return_embedding=False,
                            max_batch_tile=512, min_batch_blocks=1,
                            weight_dtype=jnp.bfloat16,
                            vmem_budget_bytes=40 * 1024 * 1024):
    """Fused forward pass of CombineGeneral.

    batch:  [B, D_in] float32
    params: W_body [D_in, H], b_body [1, H], W_head [H, D_out], b_head [1, D_out]
    mass_shift: python float or traced scalar (folded into the head bias on the host)
    return_embedding: static python bool (selects body-only vs. fused kernel)
    min_batch_blocks: set >= 2 on v7x so the "parallel" batch axis spans both TensorCores
    weight_dtype: jnp.bfloat16 (MXU-native, half VMEM/HBM) or jnp.float32 (exact)
    """
    w_body = jnp.asarray(params["W_body"])
    b_body = jnp.asarray(params["b_body"], jnp.float32).reshape(1, -1)
    w_head = jnp.asarray(params["W_head"])
    b_head = jnp.asarray(params["b_head"], jnp.float32).reshape(1, -1)

    B, D_in = batch.shape
    H = w_body.shape[1]
    D_out = w_head.shape[1]

    # Lane-dense feature dims; zero padding is inert for matmul + bias + relu.
    D_in_p = _round_up(D_in, 128)
    H_p = _round_up(H, 128)
    D_out_p = _round_up(D_out, 128)

    x_bytes = jnp.dtype(batch.dtype).itemsize
    w_bytes = jnp.dtype(weight_dtype).itemsize

    # ---- batch tiling: balanced tile size, NO row-padded copy of the batch ----
    if B <= max_batch_tile and min_batch_blocks <= 1:
        TB = B                                    # single full-extent block
    else:
        n_tiles = max(_cdiv(B, max_batch_tile), min_batch_blocks)
        TB = _round_up(_cdiv(B, n_tiles), 8)
        if TB >= B:
            TB = B

    # ---- K (D_in) reduction tiling: only if the resident W_body slab is too big ----
    # TK must exactly divide D_in_p so the reduction dim never reads garbage.
    n128 = D_in_p // 128
    k_slab_budget = 16 * 1024 * 1024
    grid_k, TK = n128, 128
    for gk in range(1, n128 + 1):
        if n128 % gk:
            continue
        tk = D_in_p // gk
        if tk * H_p * w_bytes <= k_slab_budget:
            grid_k, TK = gk, tk
            break

    def _vmem_need(tb):
        n_wb_buf = 1 if grid_k == 1 else 2
        need = 2 * tb * TK * x_bytes              # x tiles (double-buffered)
        need += n_wb_buf * TK * H_p * w_bytes     # W_body slab(s)
        need += H_p * 4                           # b_body (single buffer)
        need += tb * H_p * 4                      # f32 accumulator scratch
        if return_embedding:
            need += 2 * tb * H_p * x_bytes        # embedding output tiles
        else:
            need += H_p * D_out_p * w_bytes       # W_head (single buffer)
            need += D_out_p * 4                   # b_head + mass_shift
            need += 2 * tb * D_out_p * x_bytes    # output tiles
            need += tb * D_out_p * 4              # head matmul f32 result
        return need

    while TB > 8 and _vmem_need(TB) > vmem_budget_bytes:
        TB = max(8, _round_up(TB // 2, 8))

    grid_b = _cdiv(B, TB)
    vmem_limit = int(min(max(_vmem_need(TB) * 3 // 2 + (1 << 20), 16 << 20), 64 << 20))

    cparams = pltpu.CompilerParams(
        dimension_semantics=("parallel", "arbitrary"),
        vmem_limit_bytes=vmem_limit,
    )

    # ---- operands (column pad only; weights in weight_dtype, biases in f32) ----
    x_p = _pad2d(batch, B, D_in_p)
    wb_p = _pad2d(w_body, D_in_p, H_p).astype(weight_dtype)
    bb_p = _pad2d(b_body, 1, H_p)

    x_spec = pl.BlockSpec((TB, TK), lambda i, k: (i, k))
    wb_spec = _spec((TK, H_p), lambda i, k: (k, 0), single_buffer=(grid_k == 1))
    bb_spec = _spec((1, H_p), lambda i, k: (0, 0), single_buffer=True)
    acc_scratch = pltpu.VMEM((TB, H_p), jnp.float32)

    if return_embedding:
        flops = 2 * B * D_in_p * H_p
        bytes_acc = (x_p.size * x_bytes + wb_p.size * w_bytes + bb_p.size * 4
                     + B * H_p * x_bytes)
        emb_p = pl.pallas_call(
            _body_kernel,
            out_shape=jax.ShapeDtypeStruct((B, H_p), batch.dtype),
            grid_spec=pltpu.PrefetchScalarGridSpec(
                num_scalar_prefetch=0,
                grid=(grid_b, grid_k),
                in_specs=[x_spec, wb_spec, bb_spec],
                out_specs=pl.BlockSpec((TB, H_p), lambda i, k: (i, 0)),
                scratch_shapes=[acc_scratch],
            ),
            compiler_params=cparams,
            cost_estimate=pl.CostEstimate(flops=flops, transcendentals=0,
                                          bytes_accessed=bytes_acc),
        )(x_p, wb_p, bb_p)
        return emb_p if H_p == H else emb_p[:, :H]

    # Fold mass_shift into the head bias on the host: tiny (1, D_out) add, works with a
    # traced runtime scalar (no recompile), removes one kernel operand + one broadcast add.
    wh_p = _pad2d(w_head, H_p, D_out_p).astype(weight_dtype)
    bhm_p = _pad2d(b_head + jnp.asarray(mass_shift, jnp.float32), 1, D_out_p)

    flops = 2 * B * D_in_p * H_p + 2 * B * H_p * D_out_p
    bytes_acc = (x_p.size * x_bytes + wb_p.size * w_bytes + bb_p.size * 4
                 + wh_p.size * w_bytes + bhm_p.size * 4 + B * D_out_p * x_bytes)

    out_p = pl.pallas_call(
        _combine_kernel,
        out_shape=jax.ShapeDtypeStruct((B, D_out_p), batch.dtype),
        grid_spec=pltpu.PrefetchScalarGridSpec(
            num_scalar_prefetch=0,
            grid=(grid_b, grid_k),
            in_specs=[
                x_spec, wb_spec, bb_spec,
                _spec((H_p, D_out_p), lambda i, k: (0, 0), single_buffer=True),  # W_head
                _spec((1, D_out_p), lambda i, k: (0, 0), single_buffer=True),    # b_head + shift
            ],
            out_specs=pl.BlockSpec((TB, D_out_p), lambda i, k: (i, 0)),
            scratch_shapes=[acc_scratch],
        ),
        compiler_params=cparams,
        cost_estimate=pl.CostEstimate(flops=flops, transcendentals=0,
                                      bytes_accessed=bytes_acc),
    )(x_p, wb_p, bb_p, wh_p, bhm_p)
    return out_p if D_out_p == D_out else out_p[:, :D_out]


# ---------------------------------------------------------------------------
# reference + demo
# ---------------------------------------------------------------------------
def _reference_forward(batch, params, mass_shift, return_embedding=False):
    emb = jnp.maximum(batch @ params["W_body"] + params["b_body"], 0.0)
    if return_embedding:
        return emb
    return emb @ params["W_head"] + params["b_head"] + mass_shift


def init_params(key, d_in, hidden, d_out):
    k1, k2, k3, k4 = jax.random.split(key, 4)
    return {
        "W_body": jax.random.normal(k1, (d_in, hidden), jnp.float32) * 0.1,
        "b_body": jax.random.normal(k2, (1, hidden), jnp.float32) * 0.01,
        "W_head": jax.random.normal(k3, (hidden, d_out), jnp.float32) * 0.1,
        "b_head": jax.random.normal(k4, (1, d_out), jnp.float32) * 0.01,
    }


if __name__ == "__main__":
    key = jax.random.PRNGKey(0)
    k_x, k_p = jax.random.split(key)

    B, D_IN, HIDDEN, D_OUT = 8, 32, 32, 16
    MASS_SHIFT = 0.5

    batch = jax.random.normal(k_x, (B, D_IN), jnp.float32)
    params = init_params(k_p, D_IN, HIDDEN, D_OUT)

    # f32-weight path (exact) — fused and body-only variants.
    out_f32 = combine_general_forward(batch, params, MASS_SHIFT,
                                      weight_dtype=jnp.float32)
    emb_f32 = combine_general_forward(batch, params, MASS_SHIFT,
                                      return_embedding=True,
                                      weight_dtype=jnp.float32)
    # bf16-weight path (default): MXU-native, f32 accumulation.
    out_bf16 = combine_general_forward(batch, params, MASS_SHIFT)

    # mass_shift as a traced runtime scalar under jit (no recompile / no ConcretizationError).
    out_jit = jax.jit(
        lambda b, p, m: combine_general_forward(b, p, m, weight_dtype=jnp.float32)
    )(batch, params, jnp.float32(MASS_SHIFT))

    out_f32 = jax.block_until_ready(out_f32)
    emb_f32 = jax.block_until_ready(emb_f32)
    out_bf16 = jax.block_until_ready(out_bf16)
    out_jit = jax.block_until_ready(out_jit)

    ref_out = _reference_forward(batch, params, MASS_SHIFT, return_embedding=False)
    ref_emb = _reference_forward(batch, params, MASS_SHIFT, return_embedding=True)

    assert out_f32.shape == (B, D_OUT) and emb_f32.shape == (B, HIDDEN)
    assert jnp.allclose(out_f32, ref_out, atol=1e-5, rtol=1e-5)
    assert jnp.allclose(emb_f32, ref_emb, atol=1e-5, rtol=1e-5)
    assert jnp.allclose(out_jit, ref_out, atol=1e-5, rtol=1e-5)
    assert jnp.allclose(out_bf16, ref_out, atol=3e-2, rtol=3e-2)
    print("KERNEL_OK")
</pallas_src>

<mosaic_0001>
module attributes {stable_mosaic.version = 11 : i64} {
  func.func @_combine_kernel(%arg0: i32, %arg1: i32, %arg2: memref<8x128xf32, #tpu.memory_space<vmem>>, %arg3: memref<128x128xf32, #tpu.memory_space<vmem>>, %arg4: memref<1x128xf32, #tpu.memory_space<vmem>>, %arg5: memref<128x128xf32, #tpu.memory_space<vmem>>, %arg6: memref<1x128xf32, #tpu.memory_space<vmem>>, %arg7: memref<8x128xf32, #tpu.memory_space<vmem>>, %arg8: memref<8x128xf32, #tpu.memory_space<vmem>>) attributes {dimension_semantics = [#tpu.dimension_semantics<parallel>, #tpu.dimension_semantics<arbitrary>], iteration_bounds = array<i64: 1, 1>, scalar_prefetch = 0 : i64, scratch_operands = 1 : i64, tpu.core_type = #tpu.core_type<tc>, window_params = [{transform_indices = @transform_0, window_bounds = array<i64: 8, 128>}, {pipeline_mode = #tpu.pipeline_mode<synchronous>, transform_indices = @transform_1, window_bounds = array<i64: 128, 128>}, {pipeline_mode = #tpu.pipeline_mode<synchronous>, transform_indices = @transform_2, window_bounds = array<i64: 1, 128>}, {pipeline_mode = #tpu.pipeline_mode<synchronous>, transform_indices = @transform_3, window_bounds = array<i64: 128, 128>}, {pipeline_mode = #tpu.pipeline_mode<synchronous>, transform_indices = @transform_4, window_bounds = array<i64: 1, 128>}, {transform_indices = @transform_5, window_bounds = array<i64: 8, 128>}]} {
    %c0_i32 = arith.constant 0 : i32
    %0 = arith.cmpi eq, %arg1, %c0_i32 : i32
    %1 = arith.extui %0 : i1 to i32
    %c0_i32_0 = arith.constant 0 : i32
    %2 = arith.cmpi ne, %1, %c0_i32_0 : i32
    scf.if %2 {
      %cst_10 = arith.constant 0.000000e+00 : f32
      %12 = vector.broadcast %cst_10 : f32 to vector<8x128xf32>
      %c0_11 = arith.constant 0 : index
      %c0_12 = arith.constant 0 : index
      %13 = vector.load %arg8[%c0_11, %c0_12] : memref<8x128xf32, #tpu.memory_space<vmem>>, vector<8x128xf32>
      tpu.vector_store %arg8[%c0_11, %c0_12], %12 {strides = array<i32>} : memref<8x128xf32, #tpu.memory_space<vmem>>, vector<8x128xf32>,
    } else {
    }
    %c0 = arith.constant 0 : index
    %c0_1 = arith.constant 0 : index
    %3 = vector.load %arg8[%c0, %c0_1] : memref<8x128xf32, #tpu.memory_space<vmem>>, vector<8x128xf32>
    %c0_2 = arith.constant 0 : index
    %c0_3 = arith.constant 0 : index
    %4 = vector.load %arg2[%c0_2, %c0_3] : memref<8x128xf32, #tpu.memory_space<vmem>>, vector<8x128xf32>
    %c0_4 = arith.constant 0 : index
    %c0_5 = arith.constant 0 : index
    %5 = vector.load %arg3[%c0_4, %c0_5] : memref<128x128xf32, #tpu.memory_space<vmem>>, vector<128x128xf32>
    %cst = arith.constant dense<0.000000e+00> : vector<8x128xf32>
    %6 = tpu.matmul %4, %5, %cst {dimension_numbers = #tpu.dot_dimension_numbers<[1], [0], [0], [1], [0, 0, 1, 1], [], []>} : vector<8x128xf32>, vector<128x128xf32>, vector<8x128xf32> -> vector<8x128xf32>
    %7 = arith.addf %3, %6 : vector<8x128xf32>
    %c0_6 = arith.constant 0 : index
    %c0_7 = arith.constant 0 : index
    %8 = vector.load %arg8[%c0_6, %c0_7] : memref<8x128xf32, #tpu.memory_space<vmem>>, vector<8x128xf32>
    tpu.vector_store %arg8[%c0_6, %c0_7], %7 {strides = array<i32>} : memref<8x128xf32, #tpu.memory_space<vmem>>, vector<8x128xf32>,
    %c0_i32_8 = arith.constant 0 : i32
    %9 = arith.cmpi eq, %arg1, %c0_i32_8 : i32
    %10 = arith.extui %9 : i1 to i32
    %c0_i32_9 = arith.constant 0 : i32
    %11 = arith.cmpi ne, %10, %c0_i32_9 : i32
    scf.if %11 {
      %c0_10 = arith.constant 0 : index
      %c0_11 = arith.constant 0 : index
      %12 = vector.load %arg8[%c0_10, %c0_11] : memref<8x128xf32, #tpu.memory_space<vmem>>, vector<8x128xf32>
      %c0_12 = arith.constant 0 : index
      %c0_13 = arith.constant 0 : index
      %13 = vector.load %arg4[%c0_12, %c0_13] : memref<1x128xf32, #tpu.memory_space<vmem>>, vector<1x128xf32>
      %14 = vector.broadcast %13 : vector<1x128xf32> to vector<8x128xf32>
      %15 = arith.addf %12, %14 : vector<8x128xf32>
      %cst_14 = arith.constant 0.000000e+00 : f32
      %16 = vector.broadcast %cst_14 : f32 to vector<8x128xf32>
      %17 = arith.maximumf %15, %16 : vector<8x128xf32>
      %c0_15 = arith.constant 0 : index
      %c0_16 = arith.constant 0 : index
      %18 = vector.load %arg5[%c0_15, %c0_16] : memref<128x128xf32, #tpu.memory_space<vmem>>, vector<128x128xf32>
      %cst_17 = arith.constant dense<0.000000e+00> : vector<8x128xf32>
      %19 = tpu.matmul %17, %18, %cst_17 {dimension_numbers = #tpu.dot_dimension_numbers<[1], [0], [0], [1], [0, 0, 1, 1], [], []>} : vector<8x128xf32>, vector<128x128xf32>, vector<8x128xf32> -> vector<8x128xf32>
      %c0_18 = arith.constant 0 : index
      %c0_19 = arith.constant 0 : index
      %20 = vector.load %arg6[%c0_18, %c0_19] : memref<1x128xf32, #tpu.memory_space<vmem>>, vector<1x128xf32>
      %21 = vector.broadcast %20 : vector<1x128xf32> to vector<8x128xf32>
      %22 = arith.addf %19, %21 : vector<8x128xf32>
      %c0_20 = arith.constant 0 : index
      %c0_21 = arith.constant 0 : index
      %23 = vector.load %arg7[%c0_20, %c0_21] : memref<8x128xf32, #tpu.memory_space<vmem>>, vector<8x128xf32>
      tpu.vector_store %arg7[%c0_20, %c0_21], %22 {strides = array<i32>} : memref<8x128xf32, #tpu.memory_space<vmem>>, vector<8x128xf32>,
    } else {
    }
    return
  }
  func.func @transform_0(%arg0: i32, %arg1: i32) -> (i32, i32) {
    %c0_i32 = arith.constant 0 : i32
    return %arg0, %arg1 : i32, i32
  }
  func.func @transform_1(%arg0: i32, %arg1: i32) -> (i32, i32) {
    %c0_i32 = arith.constant 0 : i32
    %c0_i32_0 = arith.constant 0 : i32
    return %arg1, %c0_i32 : i32, i32
  }
  func.func @transform_2(%arg0: i32, %arg1: i32) -> (i32, i32) {
    %c0_i32 = arith.constant 0 : i32
    %c0_i32_0 = arith.constant 0 : i32
    %c0_i32_1 = arith.constant 0 : i32
    return %c0_i32, %c0_i32_0 : i32, i32
  }
  func.func @transform_3(%arg0: i32, %arg1: i32) -> (i32, i32) {
    %c0_i32 = arith.constant 0 : i32
    %c0_i32_0 = arith.constant 0 : i32
    %c0_i32_1 = arith.constant 0 : i32
    return %c0_i32, %c0_i32_0 : i32, i32
  }
  func.func @transform_4(%arg0: i32, %arg1: i32) -> (i32, i32) {
    %c0_i32 = arith.constant 0 : i32
    %c0_i32_0 = arith.constant 0 : i32
    %c0_i32_1 = arith.constant 0 : i32
    return %c0_i32, %c0_i32_0 : i32, i32
  }
  func.func @transform_5(%arg0: i32, %arg1: i32) -> (i32, i32) {
    %c0_i32 = arith.constant 0 : i32
    %c0_i32_0 = arith.constant 0 : i32
    return %arg0, %c0_i32 : i32, i32
  }
}

</mosaic_0001>

<bundles_post_ra>
// kernel: tpu_custom_call.1
= control target key start
LH: loop header
LB: loop body
LE: loop exit
PB: predicated region body
PF: predicated region fallthrough
CT: control target
= control target key end

     0   :  { %10 = vsyncpa [#allocation4], 0  ;;  %s568_s0 = inlined_call_operand.hbm [shape: f32[8,128], index: 0, kind: input, shape index: {}]   ;;  %s569_s1 = inlined_call_operand.hbm [shape: f32[128,128], index: 1, kind: input, shape index: {}]   ;;  %s570_s2 = inlined_call_operand.vmem [shape: f32[1,128], index: 2, kind: input, shape index: {}]   ;;  %s571_s3 = inlined_call_operand.hbm [shape: f32[128,128], index: 3, kind: input, shape index: {}]   ;;  %s572_s4 = inlined_call_operand.vmem [shape: f32[1,128], index: 4, kind: input, shape index: {}]   ;;  %s573_s5 = inlined_call_operand.hbm [shape: f32[8,128], index: 5, kind: output, shape index: {}]  }
   0x1   :  { %11 = vsyncpa [#allocation7], 0 }
   0x2   :  { %12 = vsyncpa [#allocation5], 0  ;;  %s478_s18 = smov [#allocation6]  }
   0x3   :  { %s28_s19 = sshll.u32 %s478_s18, 4  ;;  %s29_s19 = int_to_ptr.vmem [resolvable:$true] %s28_s19 }
   0x4   :  { %s400_s20 = scalar_lea.vmem %s29_s19, 2048  ;;  %p405_p1 = scmp.lt.s32.totalorder %s29_s19, %s29_s19 }
   0x5   :  { %p401_p0 = scmp.ne.s32.totalorder %s29_s19, %s400_s20  ;;  %p406_p2 = scmp.lt.s32.totalorder %s400_s20, %s400_s20 }
   0x7   :  { %p407_p3 = por %p406_p2, %p405_p1 }
   0x9   :  { %p408_p4 = pnand %p407_p3, %p401_p0 }
   0xb   :  { %411 = shalt.err (!%p408_p4)
}
   0xc   :  { %s479_s21 = smov 128   ;;  %s480_s22 = smov 8  }
   0xd   :  { %34 = dma.hbm_to_vmem [thread:$0]  %s569_s1, 2048, %s29_s19, [#allocation7], %s479_s21, %s479_s21, %s480_s22  }
   0xe   :  { %s481_s25 = smov [#allocation3]   ;;  %s482_s27 = smov [#allocation8]  }
   0xf   :  { %s19_s26 = sshll.u32 %s481_s25, 4  ;;  %s42_s28 = sshll.u32 %s482_s27, 4  ;;  %s20_s26 = int_to_ptr.vmem [resolvable:$true] %s19_s26  ;;  %s43_s28 = int_to_ptr.vmem [resolvable:$true] %s42_s28 }
  0x10   :  { %s420_s29 = scalar_lea.vmem %s20_s26, 128  ;;  %p425_p6 = scmp.lt.s32.totalorder %s20_s26, %s20_s26 }
  0x11   :  { %p421_p5 = scmp.ne.s32.totalorder %s20_s26, %s420_s29  ;;  %p426_p7 = scmp.lt.s32.totalorder %s420_s29, %s420_s29 }
  0x13   :  { %p427_p8 = por %p426_p7, %p425_p6 }
  0x15   :  { %p428_p9 = pnand %p427_p8, %p421_p5 }
  0x17   :  { %431 = shalt.err (!%p428_p9)
}
  0x18   :  { %22 = dma.hbm_to_vmem [thread:$0]  %s568_s0, 128, %s20_s26, [#allocation4]  }
  0x19   :  { %s440_s7 = scalar_lea.vmem %s43_s28, 2048  ;;  %p445_p11 = scmp.lt.s32.totalorder %s43_s28, %s43_s28 }
  0x1a   :  { %p441_p10 = scmp.ne.s32.totalorder %s43_s28, %s440_s7  ;;  %p446_p12 = scmp.lt.s32.totalorder %s440_s7, %s440_s7 }
  0x1c   :  { %p447_p13 = por %p446_p12, %p445_p11 }
  0x1e   :  { %p448_p0 = pnand %p447_p13, %p441_p10 }
  0x20   :  { %451 = shalt.err (!%p448_p0)
}
  0x21   :  { %48 = dma.hbm_to_vmem [thread:$0]  %s571_s3, 2048, %s43_s28, [#allocation7], %s479_s21, %s479_s21, %s480_s22  }
  0x22   :  { %472 = dma.done.wait [#allocation4], 128  }
  0x23   :  { %473 = vsyncadd [#allocation4], 4294967168 }
  0x24   :  { %474 = dma.done.wait [#allocation7], 4096  }
  0x25   :  { %475 = vsyncadd [#allocation7], 4294963200  ;;  %v483_v0 = vmov 0.0   ;;  %vm484_vm0 = vmmov 0   ;;  %v82_v1 = vld [vmem:[#allocation6 + $0x78] sm:$0xff]  ;;  %v81_v2 = vld [vmem:[#allocation6 + $0x70] sm:$0xff] }
  0x26   :  { %314 = vmatprep.subr.mxu0 %v483_v0  ;;  %346 = vmatprep.mubr.msk.f32.mxu0 %vm484_vm0, %v483_v0  ;;  %v80_v3 = vld [vmem:[#allocation6 + $0x68] sm:$0xff]  ;;  %v79_v4 = vld [vmem:[#allocation6 + $0x60] sm:$0xff]  ;;  %v183_v5 = vld [vmem:[#allocation8 + $0x78] sm:$0xff]  ;;  %s485_s11 = smov [#allocation9]  }
  0x27   :  { %349 = vmatprep.subr.mxu1 %v483_v0  ;;  %381 = vmatprep.mubr.msk.f32.mxu1 %vm484_vm0, %v483_v0  ;;  %v78_v6 = vld [vmem:[#allocation6 + $0x58] sm:$0xff]  ;;  %v182_v7 = vld [vmem:[#allocation8 + $0x70] sm:$0xff]  ;;  %v181_v8 = vld [vmem:[#allocation8 + $0x68] sm:$0xff]  ;;  %s268_s12 = sshll.u32 %s485_s11, 4  ;;  %s269_s12 = int_to_ptr.vmem [resolvable:$true] %s268_s12 }
  0x28   :  { %315 = vmatpush3.msra.mxu0 %v82_v1  ;;  %350 = vmatpush3.msra.mxu1 %v183_v5  ;;  %v77_v9 = vld [vmem:[#allocation6 + $0x50] sm:$0xff]  ;;  %v180_v10 = vld [vmem:[#allocation8 + $0x60] sm:$0xff]  ;;  %v76_v11 = vld [vmem:[#allocation6 + $0x48] sm:$0xff]  ;;  %s452_s13 = scalar_lea.vmem %s269_s12, 128  ;;  %p457_p2 = scmp.lt.s32.totalorder %s269_s12, %s269_s12 }
  0x29   :  { %316 = vmatprep.subr.mxu0 %v483_v0  ;;  %351 = vmatprep.subr.mxu1 %v483_v0  ;;  %v179_v12 = vld [vmem:[#allocation8 + $0x58] sm:$0xff]  ;;  %v75_v13 = vld [vmem:[#allocation6 + $0x40] sm:$0xff]  ;;  %v178_v14 = vld [vmem:[#allocation8 + $0x50] sm:$0xff]  ;;  %p453_p1 = scmp.ne.s32.totalorder %s269_s12, %s452_s13  ;;  %p458_p3 = scmp.lt.s32.totalorder %s452_s13, %s452_s13 }
  0x2a   :  { %317 = vmatpush3.msra.mxu0 %v81_v2  ;;  %352 = vmatpush3.msra.mxu1 %v182_v7  ;;  %v74_v15 = vld [vmem:[#allocation6 + $0x38] sm:$0xff]  ;;  %v177_v16 = vld [vmem:[#allocation8 + $0x48] sm:$0xff]  ;;  %v73_v17 = vld [vmem:[#allocation6 + $0x30] sm:$0xff] }
  0x2b   :  { %318 = vmatprep.subr.mxu0 %v483_v0  ;;  %353 = vmatprep.subr.mxu1 %v483_v0  ;;  %v176_v18 = vld [vmem:[#allocation8 + $0x40] sm:$0xff]  ;;  %v72_v19 = vld [vmem:[#allocation6 + $0x28] sm:$0xff]  ;;  %v175_v20 = vld [vmem:[#allocation8 + $0x38] sm:$0xff]  ;;  %p459_p4 = por %p458_p3, %p457_p2 }
  0x2c   :  { %319 = vmatpush3.msra.mxu0 %v80_v3  ;;  %354 = vmatpush3.msra.mxu1 %v181_v8  ;;  %v71_v21 = vld [vmem:[#allocation6 + $0x20] sm:$0xff]  ;;  %v174_v22 = vld [vmem:[#allocation8 + $0x30] sm:$0xff]  ;;  %v70_v23 = vld [vmem:[#allocation6 + $0x18] sm:$0xff] }
  0x2d   :  { %320 = vmatprep.subr.mxu0 %v483_v0  ;;  %355 = vmatprep.subr.mxu1 %v483_v0  ;;  %v173_v24 = vld [vmem:[#allocation8 + $0x28] sm:$0xff]  ;;  %v69_v25 = vld [vmem:[#allocation6 + $0x10] sm:$0xff]  ;;  %v172_v26 = vld [vmem:[#allocation8 + $0x20] sm:$0xff]  ;;  %p460_p5 = pnand %p459_p4, %p453_p1 }
  0x2e   :  { %321 = vmatpush3.msra.mxu0 %v79_v4  ;;  %356 = vmatpush3.msra.mxu1 %v180_v10  ;;  %v68_v27 = vld [vmem:[#allocation6 + $0x8] sm:$0xff]  ;;  %v171_v28 = vld [vmem:[#allocation8 + $0x18] sm:$0xff]  ;;  %v67_v29 = vld [vmem:[#allocation6] sm:$0xff] }
  0x2f   :  { %322 = vmatprep.subr.mxu0 %v483_v0  ;;  %357 = vmatprep.subr.mxu1 %v483_v0  ;;  %v66_v30 = vld [vmem:[#allocation3] sm:$0xff]  ;;  %v170_v31 = vld [vmem:[#allocation8 + $0x10] sm:$0xff]  ;;  %v169_v32 = vld [vmem:[#allocation8 + $0x8] sm:$0xff] }
  0x30   :  { %323 = vmatpush3.msra.mxu0 %v78_v6  ;;  %358 = vmatpush3.msra.mxu1 %v179_v12  ;;  %v168_v33 = vld [vmem:[#allocation8] sm:$0xff]  ;;  %v278_v34 = vld [vmem:[%s570_s2] ss:$0 sm:$0xff] }
  0x31   :  { %324 = vmatprep.subr.mxu0 %v483_v0  ;;  %359 = vmatprep.subr.mxu1 %v483_v0  ;;  %v279_v39 = vld [vmem:[%s572_s4] ss:$0 sm:$0xff] }
  0x32   :  { %325 = vmatpush3.msra.mxu0 %v77_v9  ;;  %360 = vmatpush3.msra.mxu1 %v178_v14 }
  0x33   :  { %326 = vmatprep.subr.mxu0 %v483_v0  ;;  %361 = vmatprep.subr.mxu1 %v483_v0 }
  0x34   :  { %327 = vmatpush3.msra.mxu0 %v76_v11  ;;  %362 = vmatpush3.msra.mxu1 %v177_v16 }
  0x35   :  { %328 = vmatprep.subr.mxu0 %v483_v0  ;;  %363 = vmatprep.subr.mxu1 %v483_v0 }
  0x36   :  { %329 = vmatpush3.msra.mxu0 %v75_v13  ;;  %364 = vmatpush3.msra.mxu1 %v176_v18 }
  0x37   :  { %330 = vmatprep.subr.mxu0 %v483_v0  ;;  %365 = vmatprep.subr.mxu1 %v483_v0 }
  0x38   :  { %331 = vmatpush3.msra.mxu0 %v74_v15  ;;  %366 = vmatpush3.msra.mxu1 %v175_v20 }
  0x39   :  { %332 = vmatprep.subr.mxu0 %v483_v0  ;;  %367 = vmatprep.subr.mxu1 %v483_v0 }
  0x3a   :  { %333 = vmatpush3.msra.mxu0 %v73_v17  ;;  %368 = vmatpush3.msra.mxu1 %v174_v22 }
  0x3b   :  { %334 = vmatprep.subr.mxu0 %v483_v0  ;;  %369 = vmatprep.subr.mxu1 %v483_v0 }
  0x3c   :  { %335 = vmatpush3.msra.mxu0 %v72_v19  ;;  %370 = vmatpush3.msra.mxu1 %v173_v24 }
  0x3d   :  { %336 = vmatprep.subr.mxu0 %v483_v0  ;;  %371 = vmatprep.subr.mxu1 %v483_v0 }
  0x3e   :  { %337 = vmatpush3.msra.mxu0 %v71_v21  ;;  %372 = vmatpush3.msra.mxu1 %v172_v26 }
  0x3f   :  { %338 = vmatprep.subr.mxu0 %v483_v0  ;;  %373 = vmatprep.subr.mxu1 %v483_v0 }
  0x40   :  { %339 = vmatpush3.msra.mxu0 %v70_v23  ;;  %374 = vmatpush3.msra.mxu1 %v171_v28 }
  0x41   :  { %340 = vmatprep.subr.mxu0 %v483_v0  ;;  %375 = vmatprep.subr.mxu1 %v483_v0 }
  0x42   :  { %341 = vmatpush3.msra.mxu0 %v69_v25  ;;  %376 = vmatpush3.msra.mxu1 %v170_v31 }
  0x43   :  { %342 = vmatprep.subr.mxu0 %v483_v0  ;;  %377 = vmatprep.subr.mxu1 %v483_v0 }
  0x44   :  { %343 = vmatpush3.msra.mxu0 %v68_v27  ;;  %378 = vmatpush3.msra.mxu1 %v169_v32 }
  0x45   :  { %344 = vmatprep.subr.mxu0 %v483_v0  ;;  %379 = vmatprep.subr.mxu1 %v483_v0 }
  0x46   :  { %345 = vmatpush3.msra.mxu0 %v67_v29  ;;  %380 = vmatpush3.msra.mxu1 %v168_v33 }
  0x47   :  { %347 = vmatmul.mubr.f32.vlgmr.msra.gmra.mxu0 %v66_v30 }
 0x107   :  { %v149_v35 = vpop.f32.mrf.mxu0 }
 0x108   :  { %v166_v36 = vadd.f32 %v278_v34, %v149_v35 }
 0x109   :  { %v348_v37 = vpop.f32.mrf.mxu0 }
 0x10a   :  { %v167_v38 = vmax.f32 %v166_v36, 0.0 }
 0x10c   :  { %382 = vmatmul.mubr.f32.vlgmr.msra.gmra.mxu1 %v167_v38 }
 0x1cc   :  { %v257_v40 = vpop.f32.mrf.mxu1 }
 0x1cd   :  { %v258_v41 = vadd.f32 %v279_v39, %v257_v40 }
 0x1ce   :  { %v383_v42 = vpop.f32.mrf.mxu1 }
 0x1cf   :  { %261 = vst [vmem:[#allocation9] sm:$0xff] %v258_v41 }
 0x1d0   :  { %463 = shalt.err (!%p460_p5)
}
 0x1d1   :  { %271 = dma.vmem_to_hbm [thread:$0]  %s269_s12, 128, %s573_s5, [#allocation5]  }
 0x1d2   :  { %476 = dma.done.wait [#allocation5], 128  }
 0x1d3   :  { %477 = vsyncadd [#allocation5], 4294967168 }
 0x1d4   :  { %275 = vsyncpa [#allocation4], 1 }
 0x1d5   :  { %276 = vsyncpa [#allocation7], 1 }
 0x1d6   :  { %277 = vsyncpa [#allocation5], 1 }

</bundles_post_ra>
